<compile_context>
chip_gen: v6e
topology: v6e:2x2x1
jax: 0.10.0
libtpu: 0.0.40
codegen_flags: <defaults>
</compile_context>

<pallas_src>
import jax
import jax.numpy as jnp
from jax.experimental import pallas as pl
from jax.experimental.pallas import tpu as pltpu


# ----------------------------------------------------------------------------
# Pallas kernel
# ----------------------------------------------------------------------------
def bpr_forward_kernel(ue_ref, ie_ref, fm_ref, uf_ref, uall_ref, invdeg_ref,
                       o_ref, acc_ref):
    """One (batch tile, U tile) grid step.

    ue_ref     : (Bt, Dp)  f32   gathered user embeddings (resident across U loop)
    ie_ref     : (Bt, Dp)  f32   gathered item embeddings (resident across U loop)
    fm_ref     : (Bt, Ut)  bf16  friend 0/1 mask rows for this U tile
    uf_ref     : (Bt, Ut)  bf16  learned friend weights rows for this U tile
    uall_ref   : (Ut, Dp)  bf16  slice of the full user embedding table
    invdeg_ref : (1, 1, Bt) f32  1/num_friends per batch row (0 if no friends)
    o_ref      : (1, 1, Bt) f32  lane-dense output slab
    acc_ref    : (Bt, Dp)  f32   VMEM accumulator for sum_f w[b,f] * user_emb[f]
    """
    j = pl.program_id(1)

    @pl.when(j == 0)
    def _init():
        acc_ref[...] = jnp.zeros_like(acc_ref)

    # Fused mask*weight (VPU, bf16) feeding the MXU; contraction dim is U (wide, 128-aligned).
    w = fm_ref[...] * uf_ref[...]                                   # (Bt, Ut) bf16
    acc_ref[...] += jnp.dot(w, uall_ref[...],
                            preferred_element_type=jnp.float32)     # (Bt, Dp) f32

    @pl.when(j == pl.num_programs(1) - 1)
    def _finalize():
        ue = ue_ref[...]
        ie = ie_ref[...]
        pos = jnp.sum(ue * ie, axis=-1)                             # (Bt,)
        inv = invdeg_ref[0, 0, :]                                   # (Bt,)
        social = jnp.sum(acc_ref[...] * ie, axis=-1) * inv          # (Bt,)
        o_ref[...] = (pos + social).reshape(1, 1, -1)


# ----------------------------------------------------------------------------
# Wrapper: padding, tiling, pallas_call
# ----------------------------------------------------------------------------
def _round_up(x, m):
    return ((x + m - 1) // m) * m


def _pad2(x, rows, cols):
    return jnp.pad(x, ((0, rows - x.shape[0]), (0, cols - x.shape[1])))


def bpr_forward(batch_user_emb, batch_item_emb, fm_rows, uf_rows,
                user_emb_table, inv_deg, *, b_tile=128, u_tile=512):
    """batch_user_emb/batch_item_emb: (B, D); fm_rows/uf_rows: (B, U);
    user_emb_table: (U, D); inv_deg: (B,). Returns (B,) f32 predictions."""
    B, D = batch_user_emb.shape
    U = user_emb_table.shape[0]

    Dp = _round_up(D, 128)
    Bt = b_tile
    Bp = _round_up(max(B, Bt), Bt)
    Ut = min(u_tile, _round_up(U, 128))
    Up = _round_up(max(U, Ut), Ut)
    nb = Bp // Bt
    nu = Up // Ut

    # Zero-pad everything so padded tail tiles contribute exactly 0.
    ue = _pad2(batch_user_emb, Bp, Dp).astype(jnp.float32)
    ie = _pad2(batch_item_emb, Bp, Dp).astype(jnp.float32)
    fm = _pad2(fm_rows, Bp, Up).astype(jnp.bfloat16)
    uf = _pad2(uf_rows, Bp, Up).astype(jnp.bfloat16)
    ua = _pad2(user_emb_table, Up, Dp).astype(jnp.bfloat16)
    iv = jnp.pad(inv_deg.astype(jnp.float32), (0, Bp - B)).reshape(nb, 1, Bt)

    out = pl.pallas_call(
        bpr_forward_kernel,
        out_shape=jax.ShapeDtypeStruct((nb, 1, Bt), jnp.float32),
        grid=(nb, nu),
        in_specs=[
            pl.BlockSpec((Bt, Dp), lambda i, j: (i, 0)),       # ue (resident over U loop)
            pl.BlockSpec((Bt, Dp), lambda i, j: (i, 0)),       # ie (resident over U loop)
            pl.BlockSpec((Bt, Ut), lambda i, j: (i, j)),       # friend-mask rows
            pl.BlockSpec((Bt, Ut), lambda i, j: (i, j)),       # friend-weight rows
            pl.BlockSpec((Ut, Dp), lambda i, j: (j, 0)),       # user embedding table slice
            pl.BlockSpec((1, 1, Bt), lambda i, j: (i, 0, 0)),  # 1/deg
        ],
        out_specs=pl.BlockSpec((1, 1, Bt), lambda i, j: (i, 0, 0)),
        scratch_shapes=[pltpu.VMEM((Bt, Dp), jnp.float32)],
        compiler_params=pltpu.CompilerParams(
            dimension_semantics=("parallel", "arbitrary"),
        ),
    )(ue, ie, fm, uf, ua, iv)

    return out.reshape(-1)[:B]


# ----------------------------------------------------------------------------
# Parameter setup + glue (plain JAX)
# ----------------------------------------------------------------------------
def xavier_uniform(key, shape):
    fan_in, fan_out = shape[1], shape[0]
    limit = jnp.sqrt(6.0 / (fan_in + fan_out))
    return jax.random.uniform(key, shape, jnp.float32, -limit, limit)


def build_params(key, num_users, num_items, embed_dim):
    k1, k2, k3 = jax.random.split(key, 3)
    item_embeddings = xavier_uniform(k1, (num_items, embed_dim))
    user_embeddings = xavier_uniform(k2, (num_users, embed_dim))
    user_friend = jax.random.uniform(k3, (num_users, num_users), jnp.float32)  # nn.init.uniform_
    return item_embeddings, user_embeddings, user_friend


def build_social_mask(num_users):
    # Deterministic synthetic social_dict encoded as a dense 0/1 mask:
    # even users are friends with the next two users (mod num_users); odd users have none.
    u = jnp.arange(num_users)
    even = (u % 2 == 0).astype(jnp.float32)
    mask = jnp.zeros((num_users, num_users), jnp.float32)
    mask = mask.at[u, (u + 1) % num_users].set(even)
    mask = mask.at[u, (u + 2) % num_users].set(even)
    return mask


def bpr_model_forward(users, items, item_emb, user_emb, user_friend, friend_mask,
                      b_tile=128, u_tile=512):
    """Glue: embedding-row gathers + per-batch operands (no dense (U,U) product built)."""
    # TODO(synk): move these row gathers into the kernel via PrefetchScalarGridSpec + row-gather
    # index_maps so user_friend/friend_mask rows are DMA'd directly from HBM per batch tile.
    batch_user_emb = user_emb[users]            # (B, D)
    batch_item_emb = item_emb[items]            # (B, D)
    fm_rows = friend_mask[users]                # (B, U)  0/1 friend mask rows
    uf_rows = user_friend[users]                # (B, U)  learned friend weights rows

    deg = jnp.sum(friend_mask, axis=-1)[users]  # (B,)
    inv_deg = jnp.where(deg > 0, 1.0 / jnp.maximum(deg, 1.0), 0.0)

    return bpr_forward(batch_user_emb, batch_item_emb, fm_rows, uf_rows,
                       user_emb, inv_deg, b_tile=b_tile, u_tile=u_tile)


# ----------------------------------------------------------------------------
# Reference (pure jnp, mirrors the PyTorch forward), f32 end-to-end
# ----------------------------------------------------------------------------
def bpr_reference(users, items, item_emb, user_emb, user_friend, friend_mask):
    bu = user_emb[users]
    bi = item_emb[items]
    pos = jnp.sum(bu * bi, axis=-1)
    w = friend_mask[users] * user_friend[users]     # (B, U)
    s = bi @ user_emb.T                             # (B, U)
    deg = jnp.sum(friend_mask, axis=-1)[users]
    inv_deg = jnp.where(deg > 0, 1.0 / jnp.maximum(deg, 1.0), 0.0)
    return pos + jnp.sum(w * s, axis=-1) * inv_deg


# ----------------------------------------------------------------------------
if __name__ == "__main__":
    num_users = 200     # pads to 256 -> two U tiles with u_tile=128 (exercises the reduction axis)
    num_items = 48
    embed_dim = 32
    batch = 8

    key = jax.random.PRNGKey(0)
    kp, ku, ki = jax.random.split(key, 3)

    item_emb, user_emb, user_friend = build_params(kp, num_users, num_items, embed_dim)
    friend_mask = build_social_mask(num_users)

    users = jax.random.randint(ku, (batch,), 0, num_users)
    items = jax.random.randint(ki, (batch,), 0, num_items)

    preds = bpr_model_forward(users, items, item_emb, user_emb, user_friend,
                              friend_mask, b_tile=128, u_tile=128)
    preds = jax.block_until_ready(preds)

    ref = bpr_reference(users, items, item_emb, user_emb, user_friend, friend_mask)
    assert preds.shape == (batch,)
    # bf16 streaming of w / user table with f32 accumulation -> loosened tolerance.
    assert jnp.allclose(preds, ref, atol=3e-2, rtol=3e-2), (preds, ref)

    print("KERNEL_OK")
</pallas_src>

<mosaic_0001>
module attributes {stable_mosaic.version = 11 : i64} {
  func.func @bpr_forward_kernel(%arg0: i32, %arg1: i32, %arg2: memref<128x128xf32, #tpu.memory_space<vmem>>, %arg3: memref<128x128xf32, #tpu.memory_space<vmem>>, %arg4: memref<128x128xbf16, #tpu.memory_space<vmem>>, %arg5: memref<128x128xbf16, #tpu.memory_space<vmem>>, %arg6: memref<128x128xbf16, #tpu.memory_space<vmem>>, %arg7: memref<1x1x128xf32, #tpu.memory_space<vmem>>, %arg8: memref<1x1x128xf32, #tpu.memory_space<vmem>>, %arg9: memref<128x128xf32, #tpu.memory_space<vmem>>) attributes {dimension_semantics = [#tpu.dimension_semantics<parallel>, #tpu.dimension_semantics<arbitrary>], iteration_bounds = array<i64: 1, 2>, scalar_prefetch = 0 : i64, scratch_operands = 1 : i64, tpu.core_type = #tpu.core_type<tc>, window_params = [{transform_indices = @transform_0, window_bounds = array<i64: 128, 128>}, {transform_indices = @transform_1, window_bounds = array<i64: 128, 128>}, {transform_indices = @transform_2, window_bounds = array<i64: 128, 128>}, {transform_indices = @transform_3, window_bounds = array<i64: 128, 128>}, {transform_indices = @transform_4, window_bounds = array<i64: 128, 128>}, {transform_indices = @transform_5, window_bounds = array<i64: 1, 1, 128>}, {transform_indices = @transform_6, window_bounds = array<i64: 1, 1, 128>}]} {
    %c0_i32 = arith.constant 0 : i32
    %0 = arith.cmpi eq, %arg1, %c0_i32 : i32
    %1 = arith.extui %0 : i1 to i32
    %c0_i32_0 = arith.constant 0 : i32
    %2 = arith.cmpi ne, %1, %c0_i32_0 : i32
    scf.if %2 {
      %cst_11 = arith.constant 0.000000e+00 : f32
      %14 = vector.broadcast %cst_11 : f32 to vector<128x128xf32>
      %c0_12 = arith.constant 0 : index
      %c0_13 = arith.constant 0 : index
      %15 = vector.load %arg9[%c0_12, %c0_13] : memref<128x128xf32, #tpu.memory_space<vmem>>, vector<128x128xf32>
      tpu.vector_store %arg9[%c0_12, %c0_13], %14 {strides = array<i32>} : memref<128x128xf32, #tpu.memory_space<vmem>>, vector<128x128xf32>,
    } else {
    }
    %c0 = arith.constant 0 : index
    %c0_1 = arith.constant 0 : index
    %3 = vector.load %arg4[%c0, %c0_1] : memref<128x128xbf16, #tpu.memory_space<vmem>>, vector<128x128xbf16>
    %c0_2 = arith.constant 0 : index
    %c0_3 = arith.constant 0 : index
    %4 = vector.load %arg5[%c0_2, %c0_3] : memref<128x128xbf16, #tpu.memory_space<vmem>>, vector<128x128xbf16>
    %5 = arith.mulf %3, %4 : vector<128x128xbf16>
    %c0_4 = arith.constant 0 : index
    %c0_5 = arith.constant 0 : index
    %6 = vector.load %arg9[%c0_4, %c0_5] : memref<128x128xf32, #tpu.memory_space<vmem>>, vector<128x128xf32>
    %c0_6 = arith.constant 0 : index
    %c0_7 = arith.constant 0 : index
    %7 = vector.load %arg6[%c0_6, %c0_7] : memref<128x128xbf16, #tpu.memory_space<vmem>>, vector<128x128xbf16>
    %cst = arith.constant dense<0.000000e+00> : vector<128x128xf32>
    %8 = tpu.matmul %5, %7, %cst {dimension_numbers = #tpu.dot_dimension_numbers<[1], [0], [0], [1], [0, 0, 1, 1], [], []>} : vector<128x128xbf16>, vector<128x128xbf16>, vector<128x128xf32> -> vector<128x128xf32>
    %9 = arith.addf %6, %8 : vector<128x128xf32>
    %c0_8 = arith.constant 0 : index
    %c0_9 = arith.constant 0 : index
    %10 = vector.load %arg9[%c0_8, %c0_9] : memref<128x128xf32, #tpu.memory_space<vmem>>, vector<128x128xf32>
    tpu.vector_store %arg9[%c0_8, %c0_9], %9 {strides = array<i32>} : memref<128x128xf32, #tpu.memory_space<vmem>>, vector<128x128xf32>,
    %c1_i32 = arith.constant 1 : i32
    %11 = arith.cmpi eq, %arg1, %c1_i32 : i32
    %12 = arith.extui %11 : i1 to i32
    %c0_i32_10 = arith.constant 0 : i32
    %13 = arith.cmpi ne, %12, %c0_i32_10 : i32
    scf.if %13 {
      %c0_11 = arith.constant 0 : index
      %c0_12 = arith.constant 0 : index
      %14 = vector.load %arg2[%c0_11, %c0_12] : memref<128x128xf32, #tpu.memory_space<vmem>>, vector<128x128xf32>
      %c0_13 = arith.constant 0 : index
      %c0_14 = arith.constant 0 : index
      %15 = vector.load %arg3[%c0_13, %c0_14] : memref<128x128xf32, #tpu.memory_space<vmem>>, vector<128x128xf32>
      %16 = arith.mulf %14, %15 : vector<128x128xf32>
      %cst_15 = arith.constant dense<0.000000e+00> : vector<128xf32>
      %17 = vector.multi_reduction <add>, %16, %cst_15 [1] : vector<128x128xf32> to vector<128xf32>
      %c0_16 = arith.constant 0 : index
      %c0_17 = arith.constant 0 : index
      %c0_18 = arith.constant 0 : index
      %18 = vector.load %arg7[%c0_16, %c0_17, %c0_18] : memref<1x1x128xf32, #tpu.memory_space<vmem>>, vector<1x1x128xf32>
      %19 = vector.shape_cast %18 : vector<1x1x128xf32> to vector<128xf32>
      %c0_19 = arith.constant 0 : index
      %c0_20 = arith.constant 0 : index
      %20 = vector.load %arg9[%c0_19, %c0_20] : memref<128x128xf32, #tpu.memory_space<vmem>>, vector<128x128xf32>
      %21 = arith.mulf %20, %15 : vector<128x128xf32>
      %cst_21 = arith.constant dense<0.000000e+00> : vector<128xf32>
      %22 = vector.multi_reduction <add>, %21, %cst_21 [1] : vector<128x128xf32> to vector<128xf32>
      %23 = arith.mulf %22, %19 : vector<128xf32>
      %24 = arith.addf %17, %23 : vector<128xf32>
      %25 = vector.shape_cast %24 : vector<128xf32> to vector<1x1x128xf32>
      %c0_22 = arith.constant 0 : index
      %c0_23 = arith.constant 0 : index
      %c0_24 = arith.constant 0 : index
      %26 = vector.load %arg8[%c0_22, %c0_23, %c0_24] : memref<1x1x128xf32, #tpu.memory_space<vmem>>, vector<1x1x128xf32>
      tpu.vector_store %arg8[%c0_22, %c0_23, %c0_24], %25 {strides = array<i32>} : memref<1x1x128xf32, #tpu.memory_space<vmem>>, vector<1x1x128xf32>,
    } else {
    }
    return
  }
  func.func @transform_0(%arg0: i32, %arg1: i32) -> (i32, i32) {
    %c0_i32 = arith.constant 0 : i32
    %c0_i32_0 = arith.constant 0 : i32
    return %arg0, %c0_i32 : i32, i32
  }
  func.func @transform_1(%arg0: i32, %arg1: i32) -> (i32, i32) {
    %c0_i32 = arith.constant 0 : i32
    %c0_i32_0 = arith.constant 0 : i32
    return %arg0, %c0_i32 : i32, i32
  }
  func.func @transform_2(%arg0: i32, %arg1: i32) -> (i32, i32) {
    %c0_i32 = arith.constant 0 : i32
    return %arg0, %arg1 : i32, i32
  }
  func.func @transform_3(%arg0: i32, %arg1: i32) -> (i32, i32) {
    %c0_i32 = arith.constant 0 : i32
    return %arg0, %arg1 : i32, i32
  }
  func.func @transform_4(%arg0: i32, %arg1: i32) -> (i32, i32) {
    %c0_i32 = arith.constant 0 : i32
    %c0_i32_0 = arith.constant 0 : i32
    return %arg1, %c0_i32 : i32, i32
  }
  func.func @transform_5(%arg0: i32, %arg1: i32) -> (i32, i32, i32) {
    %c0_i32 = arith.constant 0 : i32
    %c0_i32_0 = arith.constant 0 : i32
    %c0_i32_1 = arith.constant 0 : i32
    return %arg0, %c0_i32, %c0_i32_0 : i32, i32, i32
  }
  func.func @transform_6(%arg0: i32, %arg1: i32) -> (i32, i32, i32) {
    %c0_i32 = arith.constant 0 : i32
    %c0_i32_0 = arith.constant 0 : i32
    %c0_i32_1 = arith.constant 0 : i32
    return %arg0, %c0_i32, %c0_i32_0 : i32, i32, i32
  }
}

</mosaic_0001>

<bundles_post_ra>
// kernel: tpu_custom_call.1
= control target key start
LH: loop header
LB: loop body
LE: loop exit
PB: predicated region body
PF: predicated region fallthrough
CT: control target
= control target key end

     0   :  { %s2143_s0 = inlined_call_operand.hbm [shape: f32[128,128], index: 0, kind: input, shape index: {}]   ;;  %s2144_s1 = inlined_call_operand.hbm [shape: f32[128,128], index: 1, kind: input, shape index: {}]   ;;  %s2145_s2 = inlined_call_operand.hbm [shape: bf16[128,256], index: 2, kind: input, shape index: {}]   ;;  %s2146_s3 = inlined_call_operand.hbm [shape: bf16[128,256], index: 3, kind: input, shape index: {}]   ;;  %s2147_s4 = inlined_call_operand.hbm [shape: bf16[256,128], index: 4, kind: input, shape index: {}]   ;;  %s2148_s5 = inlined_call_operand.vmem [shape: f32[1,1,128], index: 5, kind: input, shape index: {}]   ;;  %s2149_s6 = inlined_call_operand.hbm [shape: f32[1,1,128], index: 6, kind: output, shape index: {}]  }
   0x1   :  { %2156 = sst [smem:[#allocation19_spill]] %s2143_s0 }
   0x2   :  { %2157 = sst [smem:[#allocation20_spill]] %s2145_s2 }
   0x3   :  { %11 = vsyncpa [#allocation4], 0 }
   0x4   :  { %12 = vsyncpa [#allocation7], 0 }
   0x5   :  { %13 = vsyncpa [#allocation5], 0  ;;  %s1823_s21 = smov 0   ;;  %s1825_s22 = smov 0  }
   0x6   :  { %s1827_s23 = smov 0   ;;  %s1829_s24 = smov 0  }
   0x7   :  { %s1831_s25 = smov 0   ;;  %s1833_s26 = smov 0  }
   0x8 LB: > { %2158 = sst [smem:[#allocation16_spill]] %s1762_s23  ;;  %s1852_s27 = sadd.s32 4294967295, %s1774_s26   ;;  %s1774_s26 = sphi %s1833_s26, %s19_s26   ;;  %s1770_s25 = sphi %s1831_s25, %s2180_s25   ;;  %s1766_s24 = sphi %s1829_s24, %s2179_s24   ;;  %s1762_s23 = sphi %s1827_s23, %s2175_s23   ;;  %s1758_s22 = sphi %s1825_s22, %s2178_s22   ;;  %s1754_s21 = sphi %s1823_s21, %s2177_s21  }
   0x9   : > { %p99_p0 = scmp.ne.s32.totalorder %s1762_s23, %s1758_s22  ;;  %p100_p1 = scmp.eq.s32.totalorder %s1774_s26, 0 }
   0xa   : > { %p105_p2 = scmp.ne.s32.totalorder %s1758_s22, %s1754_s21  ;;  %p2150_p3 = scmp.eq.s32.totalorder %s1852_s27, 0 }
   0xb   : > { %p101_p4 = por %p100_p1, %p99_p0  ;;  %p1337_p5 = scmp.ge.s32.totalorder %s1774_s26, 1 }
   0xc   : > { %p1863_p6 = por %p2150_p3, %p105_p2  ;;  %p222_p7 = scmp.lt.s32.totalorder %s1774_s26, 3 }
   0xd   : > { %s1776_s7 = smov [#allocation3]   ;;  %p1480_p10 = scmp.lt.s32.totalorder %s1774_s26, 2 }
   0xe   : > { %p1868_p8 = pnand %p1337_p5, %p222_p7  ;;  %s237_s8 = sshll.u32 %s1776_s7, 4  ;;  %s238_s8 = int_to_ptr.vmem [resolvable:$true] %s237_s8 }
   0xf   : > { %p1881_p12 = pnand %p1480_p10, %p101_p4  ;;  %s28_s11 = sadd.s32 1, %s1770_s25 }
  0x10   : > { %p1461_p9 = pneg %p1868_p8  ;;  %s1563_s12 = scalar_lea.vmem %s238_s8, 2048 }
  0x11   : > { %p1564_p0 = scmp.ne.s32.totalorder %s238_s8, %s1563_s12  ;;  %p1571_p5 = scmp.lt.s32.totalorder %s238_s8, %s238_s8 }
  0x12   : > { %p1877_p11 = pnand %p1461_p9, %p2150_p3  ;;  %p1572_p7 = scmp.lt.s32.totalorder %s1563_s12, %s1563_s12 }
  0x14   : > { %p1554_p13 = pneg %p1877_p11  ;;  %p1573_p9 = por %p1572_p7, %p1571_p5 }
  0x16   : > { %p1566_p1 = pnand %p1564_p0, %p1554_p13 }
  0x18   : > { %p1567_p2 = pneg %p1566_p1 }
  0x1a   : > { %p1574_p3 = pnand %p1573_p9, %p1567_p2 }
  0x1c   : > { %1577 = shalt.err (!%p1574_p3)
}
  0x1d   : > { %s2152_s13 = smov 128   ;;  %s2151_s14 = smov 8  }
  0x1e   : > { %s2163_s0 = sld [smem:[#allocation19_spill]]  ;;  %p29_p4 = scmp.ge.s32.totalorder %s28_s11, 2 }
  0x1f   : > { %s273_s17 = sand.u32 1, %s1774_s26   ;;  %s275_s18 = sand.u32 1, %s1762_s23  }
  0x20   : > { %s2182_s11 = smov (%p29_p4, %s28_s11), 0  ;;  %s1903_s19 = sshll.u32 %s275_s18, 6 }
  0x21   : > { %2164 = sst [smem:[#allocation17_spill]] %s2182_s11  ;;  %s88_s20 = ssub.s32 %s1770_s25, %s2182_s11 }
  0x22   : > { %p90_p3 = scmp.eq.s32.totalorder %s88_s20, 0  ;;  %s1343_s21 = sshll.u32 %s1770_s25, 6 }
  0x23   : > { %s2165_s2 = sld [smem:[#allocation20_spill]]  ;;  %s277_s15 = scalar_lea.vmem [#allocation8], %s1903_s19 }
  0x24   : > { %1464 = dma.hbm_to_vmem [thread:$0]  (!%p1877_p11), %s2163_s0, 2048, %s238_s8, [#allocation4], %s2152_s13, %s2152_s13, %s2151_s14  }
  0x25   : > { %s286_s16 = sshll.u32 %s277_s15, 4  ;;  %s2166_s8 = sadd.s32 1, %s1762_s23  ;;  %s287_s16 = int_to_ptr.vmem [resolvable:$true] %s286_s16 }
  0x26   : > { %s1915_s14 = scalar_select %p90_p3, %s1762_s23, %s2166_s8  }
  0x27   : > { %s1917_s13 = scalar_lea.sflag [#allocation4], %s273_s17  ;;  %p1580_p10 = pneg %p1881_p12 }
  0x28   : > { %2167 = sst [smem:[#allocation18_spill]] %s1915_s14  ;;  %s1591_s18 = scalar_lea.vmem %s287_s16, 1024 }
  0x29   : > { %s285_s28 = scalar_lea.hbm %s2165_s2, %s1343_s21  ;;  %p1592_p0 = scmp.ne.s32.totalorder %s287_s16, %s1591_s18 }
  0x2a   : > { %s1779_s20 = smov [#allocation8]  }
  0x2b   : > { %p1594_p1 = pnand %p1592_p0, %p1580_p10  ;;  %s1596_s0 = sshll.u32 %s1779_s20, 4  ;;  %s1597_s0 = int_to_ptr.vmem [resolvable:$false] %s1596_s0 }
  0x2c   : > { %s1598_s7 = scalar_lea.vmem %s1597_s0, 2048  ;;  %p1599_p5 = scmp.lt.s32.totalorder %s287_s16, %s1597_s0 }
  0x2d   : > { %p1595_p2 = pneg %p1594_p1  ;;  %p1600_p7 = scmp.lt.s32.totalorder %s1598_s7, %s1591_s18 }
  0x2f   : > { %p1601_p9 = por %p1600_p7, %p1599_p5 }
  0x31   : > { %p1602_p4 = pnand %p1601_p9, %p1595_p2 }
  0x33   : > { %1605 = shalt.err (!%p1602_p4)
}
  0x34   : > { %s1780_s12 = smov 64   ;;  %s1781_s17 = smov 4  }
  0x35   : > { %s2168_s15 = smov 128   ;;  %s308_s2 = scalar_lea.hbm %s2146_s3, %s1343_s21 }
  0x36   : > { %1471 = dma.hbm_to_vmem [thread:$0]  (!%p1881_p12), %s285_s28, 1024, %s287_s16, %s1917_s13, %s2168_s15, %s1780_s12, %s1781_s17  }
  0x37   : > { %s300_s0 = scalar_lea.vmem [#allocation9], %s1903_s19  ;;  %s1782_s11 = smov [#allocation9]  }
  0x38   : > { %s309_s18 = sshll.u32 %s300_s0, 4  ;;  %s1624_s14 = sshll.u32 %s1782_s11, 4  ;;  %s310_s18 = int_to_ptr.vmem [resolvable:$true] %s309_s18  ;;  %s1625_s14 = int_to_ptr.vmem [resolvable:$false] %s1624_s14 }
  0x39   : > { %s1619_s7 = scalar_lea.vmem %s310_s18, 1024  ;;  %s1626_s23 = scalar_lea.vmem %s1625_s14, 2048 }
  0x3a   : > { %p1620_p3 = scmp.ne.s32.totalorder %s310_s18, %s1619_s7  ;;  %p1627_p2 = scmp.lt.s32.totalorder %s310_s18, %s1625_s14 }
  0x3b   : > { %p1628_p5 = scmp.lt.s32.totalorder %s1626_s23, %s1619_s7 }
  0x3c   : > { %p1622_p0 = pnand %p1620_p3, %p1580_p10 }
  0x3d   : > { %p1629_p7 = por %p1628_p5, %p1627_p2 }
  0x3e   : > { %p1623_p1 = pneg %p1622_p0 }
  0x40   : > { %p1630_p9 = pnand %p1629_p7, %p1623_p1 }
  0x42   : > { %1633 = shalt.err (!%p1630_p9)
}
  0x43   : > { %1474 = dma.hbm_to_vmem [thread:$0]  (!%p1881_p12), %s308_s2, 1024, %s310_s18, %s1917_s13, %s2168_s15, %s1780_s12, %s1781_s17  }
  0x44   : > { %s1783_s28 = smov [#allocation6]   ;;  %s1378_s11 = sshll.u32 %s1770_s25, 10 }
  0x45   : > { %s253_s21 = sshll.u32 %s1783_s28, 4  ;;  %s254_s21 = int_to_ptr.vmem [resolvable:$true] %s253_s21 }
  0x46   : > { %s1645_s16 = scalar_lea.vmem %s254_s21, 2048  ;;  %p1653_p1 = scmp.lt.s32.totalorder %s254_s21, %s254_s21 }
  0x47   : > { %p1646_p4 = scmp.ne.s32.totalorder %s254_s21, %s1645_s16  ;;  %p1654_p2 = scmp.lt.s32.totalorder %s1645_s16, %s1645_s16 }
  0x49   : > { %p1648_p3 = pnand %p1646_p4, %p1554_p13  ;;  %p1655_p5 = por %p1654_p2, %p1653_p1 }
  0x4b   : > { %p1649_p0 = pneg %p1648_p3 }
  0x4d   : > { %p1656_p7 = pnand %p1655_p5, %p1649_p0 }
  0x4f   : > { %1659 = shalt.err (!%p1656_p7)
}
  0x50   : > { %s2169_s23 = smov 8   ;;  %s329_s0 = scalar_lea.hbm %s2147_s4, %s1378_s11 }
  0x51   : > { %1467 = dma.hbm_to_vmem [thread:$0]  (!%p1877_p11), %s2144_s1, 2048, %s254_s21, [#allocation7], %s2168_s15, %s2168_s15, %s2169_s23  }
  0x52   : > { %s323_s18 = scalar_lea.vmem [#allocation10], %s1903_s19  ;;  %s1784_s9 = smov [#allocation10]  }
  0x53   : > { %s330_s7 = sshll.u32 %s323_s18, 4  ;;  %s1678_s16 = sshll.u32 %s1784_s9, 4  ;;  %s331_s7 = int_to_ptr.vmem [resolvable:$true] %s330_s7  ;;  %s1679_s16 = int_to_ptr.vmem [resolvable:$false] %s1678_s16 }
  0x54   : > { %s1673_s28 = scalar_lea.vmem %s331_s7, 1024  ;;  %s1680_s2 = scalar_lea.vmem %s1679_s16, 2048 }
  0x55   : > { %p1674_p13 = scmp.ne.s32.totalorder %s331_s7, %s1673_s28  ;;  %p1681_p3 = scmp.lt.s32.totalorder %s331_s7, %s1679_s16 }
  0x56   : > { %p1682_p0 = scmp.lt.s32.totalorder %s1680_s2, %s1673_s28 }
  0x57   : > { %p1676_p9 = pnand %p1674_p13, %p1580_p10 }
  0x58   : > { %p1683_p11 = por %p1682_p0, %p1681_p3 }
  0x59   : > { %p1677_p4 = pneg %p1676_p9 }
  0x5b   : > { %p1684_p1 = pnand %p1683_p11, %p1677_p4 }
  0x5d   : > { %1687 = shalt.err (!%p1684_p1)
}
  0x5e   : > { %1477 = dma.hbm_to_vmem [thread:$0]  (!%p1881_p12), %s329_s0, 1024, %s331_s7, %s1917_s13, %s1780_s12, %s1780_s12, %s1781_s17  }
  0x5f   : > { %342 = sbr.rel (%p1868_p8) target bundleno = 845 (0x34d), region = 44  ;;  %p2170_p10 = scmp.eq.s32.totalorder (!%p1868_p8), %s1852_s27, 0 }
  0x64   : > { %1737 = dma.done.wait (%p2170_p10), [#allocation4], 2048   ;;  %p2171_p2 = pmov %p2170_p10 }
  0x66   : > { %1739 = vsyncadd (%p2171_p2), [#allocation4], 4294965248  ;;  %p2172_p5 = pmov %p2171_p2 }
  0x67   : > { %p2173_p7 = pmov %p2171_p2 }
  0x68   : > { %1741 = dma.done.wait (%p2172_p5), [#allocation7], 2048  }
  0x69   : > { %1743 = vsyncadd (%p2173_p7), [#allocation7], 4294965248  ;;  %s352_s10 = sand.u32 1, %s1852_s27   ;;  %s354_s13 = sand.u32 1, %s1758_s22  }
  0x6a   : > { %s1352_s19 = sshll.u32 %s354_s13, 6  ;;  %s353_s30 = scalar_lea.sflag [#allocation4], %s352_s10 }
  0x6b   : > { %s1980_s12 = scalar_lea.vmem [#allocation8], %s1352_s19 }
  0x6c   : > { %1745 = dma.done.wait (%p1863_p6), %s353_s30, 3072  }
  0x6d   : > { %1747 = vsyncadd (%p1863_p6), %s353_s30, 4294964224  ;;  %s1986_s17 = scalar_lea.vmem [#allocation9], %s1352_s19  ;;  %s1988_s15 = scalar_lea.vmem [#allocation10], %s1352_s19 }
  0x6e   : > { %p1355_p8 = scmp.ne.s32.totalorder %s1766_s24, 0 }
  0x70   : > { %423 = sbr.rel (%p1355_p8) target bundleno = 126 (0x7e), region = 68 }
  0x75   : > { %v1785_v0 = vmov 0.0  }
  0x76   : > { %424 = vst [vmem:[#allocation2 + $0x30] sm:$0xff] %v1785_v0  ;;  %425 = vst [vmem:[#allocation2] sm:$0xff] %v1785_v0 }
  0x77   : > { %426 = vst [vmem:[#allocation2 + $0x58] sm:$0xff] %v1785_v0  ;;  %427 = vst [vmem:[#allocation2 + $0x18] sm:$0xff] %v1785_v0 }
  0x78   : > { %428 = vst [vmem:[#allocation2 + $0x50] sm:$0xff] %v1785_v0  ;;  %429 = vst [vmem:[#allocation2 + $0x68] sm:$0xff] %v1785_v0 }
  0x79   : > { %430 = vst [vmem:[#allocation2 + $0x8] sm:$0xff] %v1785_v0  ;;  %431 = vst [vmem:[#allocation2 + $0x48] sm:$0xff] %v1785_v0 }
  0x7a   : > { %432 = vst [vmem:[#allocation2 + $0x40] sm:$0xff] %v1785_v0  ;;  %433 = vst [vmem:[#allocation2 + $0x20] sm:$0xff] %v1785_v0 }
  0x7b   : > { %434 = vst [vmem:[#allocation2 + $0x10] sm:$0xff] %v1785_v0  ;;  %435 = vst [vmem:[#allocation2 + $0x38] sm:$0xff] %v1785_v0 }
  0x7c   : > { %436 = vst [vmem:[#allocation2 + $0x60] sm:$0xff] %v1785_v0  ;;  %437 = vst [vmem:[#allocation2 + $0x70] sm:$0xff] %v1785_v0 }
  0x7d   : > { %438 = vst [vmem:[#allocation2 + $0x78] sm:$0xff] %v1785_v0  ;;  %439 = vst [vmem:[#allocation2 + $0x28] sm:$0xff] %v1785_v0 }
  0x7e PF: > { %v1542_v1 = vld [vmem:[%s1988_s15 + $0x38] sm:$0xff]   ;;  %v1543_v2 = vld [vmem:[%s1988_s15 + $0x30] sm:$0xff]   ;;  %v1544_v3 = vld [vmem:[%s1988_s15 + $0x28] sm:$0xff]   ;;  %p1372_p6 = scmp.ne.s32.totalorder %s1766_s24, 1 }
  0x7f   : > { %1395 = vmatprep.subr.bf16.mxu0 %v1542_v1  ;;  %1427 = vmatprep.subr.bf16.mxu1 %v1542_v1  ;;  %v1545_v4 = vld [vmem:[%s1988_s15 + $0x20] sm:$0xff]   ;;  %v1546_v17 = vld [vmem:[%s1988_s15 + $0x18] sm:$0xff]   ;;  %v1547_v20 = vld [vmem:[%s1988_s15 + $0x10] sm:$0xff]  }
  0x80   : > { %1396 = vmatpush3.bf16.msra.mxu0 %v1542_v1  ;;  %1435 = vmatpush3.bf16.msra.mxu1 %v1542_v1  ;;  %v440_v5 = vld [vmem:[%s1980_s12] sm:$0xf]  ;;  %v441_v6 = vld [vmem:[%s1980_s12 + $0x4] sm:$0xf]  ;;  %v1548_v21 = vld [vmem:[%s1988_s15 + $0x8] sm:$0xff]  }
  0x81   : > { %1397 = vmatprep.subr.bf16.mxu0 %v1543_v2  ;;  %1428 = vmatprep.subr.bf16.mxu1 %v1543_v2  ;;  %v456_v7 = vld [vmem:[%s1986_s17] sm:$0xf]  ;;  %v457_v8 = vld [vmem:[%s1986_s17 + $0x4] sm:$0xf]  ;;  %v442_v22 = vld [vmem:[%s1980_s12 + $0x8] sm:$0xf] }
  0x82   : > { %v472_v9 = vmul.bf16 %v456_v7, %v440_v5  ;;  %v448_v10 = vld [vmem:[%s1980_s12 + $0x20] sm:$0xf]  ;;  %v449_v11 = vld [vmem:[%s1980_s12 + $0x24] sm:$0xf]  ;;  %v473_v12 = vmul.bf16 %v457_v8, %v441_v6  ;;  %v458_v23 = vld [vmem:[%s1986_s17 + $0x8] sm:$0xf] }
  0x83   : > { %v464_v13 = vld [vmem:[%s1986_s17 + $0x20] sm:$0xf]  ;;  %v465_v14 = vld [vmem:[%s1986_s17 + $0x24] sm:$0xf]  ;;  %v443_v24 = vld [vmem:[%s1980_s12 + $0xc] sm:$0xf]  ;;  %v474_v39 = vmul.bf16 %v458_v23, %v442_v22 }
  0x84   : > { %1398 = vmatpush3.bf16.msra.mxu0 %v1543_v2  ;;  %1436 = vmatpush3.bf16.msra.mxu1 %v1543_v2  ;;  %v480_v15 = vmul.bf16 %v464_v13, %v448_v10  ;;  %v481_v16 = vmul.bf16 %v465_v14, %v449_v11  ;;  %v1356_v18 = vcombine.low %v472_v9, %v473_v12  ;;  %v459_v25 = vld [vmem:[%s1986_s17 + $0xc] sm:$0xf]  ;;  %v450_v26 = vld [vmem:[%s1980_s12 + $0x28] sm:$0xf]  ;;  %v1549_v29 = vld [vmem:[%s1988_s15] sm:$0xff]  }
  0x85   : > { %1399 = vmatprep.subr.bf16.mxu0 %v1544_v3  ;;  %1429 = vmatprep.subr.bf16.mxu1 %v1544_v3  ;;  %v451_v27 = vld [vmem:[%s1980_s12 + $0x2c] sm:$0xf]  ;;  %v466_v28 = vld [vmem:[%s1986_s17 + $0x28] sm:$0xf]  ;;  %v444_v31 = vld [vmem:[%s1980_s12 + $0x10] sm:$0xf]  ;;  %v475_v40 = vmul.bf16 %v459_v25, %v443_v24 }
  0x86   : > { %v1360_v19 = vcombine.low %v480_v15, %v481_v16  ;;  %1411 = vmatprep.mubr.bf16.mxu0 %v1356_v18  ;;  %v467_v30 = vld [vmem:[%s1986_s17 + $0x2c] sm:$0xf]  ;;  %v445_v32 = vld [vmem:[%s1980_s12 + $0x14] sm:$0xf]  ;;  %v460_v33 = vld [vmem:[%s1986_s17 + $0x10] sm:$0xf]  ;;  %v482_v41 = vmul.bf16 %v466_v28, %v450_v26 }
  0x87   : > { %v461_v34 = vld [vmem:[%s1986_s17 + $0x14] sm:$0xf]  ;;  %v452_v35 = vld [vmem:[%s1980_s12 + $0x30] sm:$0xf]  ;;  %v483_v42 = vmul.bf16 %v467_v30, %v451_v27  ;;  %v476_v43 = vmul.bf16 %v460_v33, %v444_v31  ;;  %v446_v47 = vld [vmem:[%s1980_s12 + $0x18] sm:$0xf]  ;;  %v1357_v49 = vcombine.low %v474_v39, %v475_v40 }
  0x88   : > { %1400 = vmatpush3.bf16.msra.mxu0 %v1544_v3  ;;  %1437 = vmatpush3.bf16.msra.mxu1 %v1544_v3  ;;  %v453_v36 = vld [vmem:[%s1980_s12 + $0x34] sm:$0xf]  ;;  %v468_v37 = vld [vmem:[%s1986_s17 + $0x30] sm:$0xf]  ;;  %v477_v44 = vmul.bf16 %v461_v34, %v445_v32  ;;  %v447_v48 = vld [vmem:[%s1980_s12 + $0x1c] sm:$0xf] }
  0x89   : > { %1401 = vmatprep.subr.bf16.mxu0 %v1545_v4  ;;  %1430 = vmatprep.subr.bf16.mxu1 %v1545_v4  ;;  %v469_v38 = vld [vmem:[%s1986_s17 + $0x34] sm:$0xf]  ;;  %v484_v45 = vmul.bf16 %v468_v37, %v452_v35  ;;  %v1361_v50 = vcombine.low %v482_v41, %v483_v42  ;;  %v462_v51 = vld [vmem:[%s1986_s17 + $0x18] sm:$0xf]  ;;  %v463_v52 = vld [vmem:[%s1986_s17 + $0x1c] sm:$0xf] }
  0x8a   : > { %1419 = vmatprep.mubr.bf16.mxu1 %v1360_v19  ;;  %v485_v46 = vmul.bf16 %v469_v38, %v453_v36  ;;  %v454_v53 = vld [vmem:[%s1980_s12 + $0x38] sm:$0xf]  ;;  %v1358_v54 = vcombine.low %v476_v43, %v477_v44  ;;  %v455_v56 = vld [vmem:[%s1980_s12 + $0x3c] sm:$0xf]  ;;  %v478_v59 = vmul.bf16 %v462_v51, %v446_v47  ;;  %v479_v60 = vmul.bf16 %v463_v52, %v447_v48  ;;  %v498_v2 = vld [vmem:[#allocation2 + $0x10] sm:$0xff] }
  0x8b   : > { %v470_v57 = vld [vmem:[%s1986_s17 + $0x38] sm:$0xf]  ;;  %v471_v58 = vld [vmem:[%s1986_s17 + $0x3c] sm:$0xf]  ;;  %v488_v5 = vld [vmem:[#allocation2 + $0x30] sm:$0xff] }
  0x8c   : > { %1402 = vmatpush3.bf16.msra.mxu0 %v1545_v4  ;;  %1438 = vmatpush3.bf16.msra.mxu1 %v1545_v4  ;;  %v1362_v55 = vcombine.low %v484_v45, %v485_v46  ;;  %v486_v61 = vmul.bf16 %v470_v57, %v454_v53  ;;  %v487_v62 = vmul.bf16 %v471_v58, %v455_v56  ;;  %v490_v1 = vld [vmem:[#allocation2 + $0x58] sm:$0xff]  ;;  %v496_v6 = vld [vmem:[#allocation2 + $0x40] sm:$0xff]  ;;  %v494_v23 = vld [vmem:[#allocation2 + $0x8] sm:$0xff] }
  0x8d   : > { %1403 = vmatprep.subr.bf16.mxu0 %v1546_v17  ;;  %1431 = vmatprep.subr.bf16.mxu1 %v1546_v17  ;;  %v1359_v63 = vcombine.low %v478_v59, %v479_v60  ;;  %v491_v11 = vld [vmem:[#allocation2 + $0x18] sm:$0xff]  ;;  %v497_v18 = vld [vmem:[#allocation2 + $0x20] sm:$0xff]  ;;  %v495_v35 = vld [vmem:[#allocation2 + $0x48] sm:$0xff] }
  0x8e   : > { %v1363_v0 = vcombine.low %v486_v61, %v487_v62  ;;  %v499_v12 = vld [vmem:[#allocation2 + $0x38] sm:$0xff]  ;;  %v500_v30 = vld [vmem:[#allocation2 + $0x60] sm:$0xff]  ;;  %v503_v36 = vld [vmem:[#allocation2 + $0x28] sm:$0xff] }
  0x8f   : > { %v502_v24 = vld [vmem:[#allocation2 + $0x78] sm:$0xff]  ;;  %v493_v41 = vld [vmem:[#allocation2 + $0x68] sm:$0xff]  ;;  %v501_v42 = vld [vmem:[#allocation2 + $0x70] sm:$0xff] }
  0x90   : > { %1404 = vmatpush3.bf16.msra.mxu0 %v1546_v17  ;;  %1439 = vmatpush3.bf16.msra.mxu1 %v1546_v17  ;;  %v489_v17 = vld [vmem:[#allocation2] sm:$0xff] }
  0x91   : > { %1405 = vmatprep.subr.bf16.mxu0 %v1547_v20  ;;  %1432 = vmatprep.subr.bf16.mxu1 %v1547_v20 }
  0x94   : > { %1406 = vmatpush3.bf16.msra.mxu0 %v1547_v20  ;;  %1440 = vmatpush3.bf16.msra.mxu1 %v1547_v20 }
  0x95   : > { %1407 = vmatprep.subr.bf16.mxu0 %v1548_v21  ;;  %1433 = vmatprep.subr.bf16.mxu1 %v1548_v21 }
  0x98   : > { %1408 = vmatpush3.bf16.msra.mxu0 %v1548_v21  ;;  %1441 = vmatpush3.bf16.msra.mxu1 %v1548_v21 }
  0x99   : > { %1409 = vmatprep.subr.bf16.mxu0 %v1549_v29  ;;  %1434 = vmatprep.subr.bf16.mxu1 %v1549_v29 }
  0x9c   : > { %1410 = vmatpush3.bf16.msra.mxu0 %v1549_v29  ;;  %1442 = vmatpush3.bf16.msra.mxu1 %v1549_v29  ;;  %v492_v29 = vld [vmem:[#allocation2 + $0x50] sm:$0xff] }
  0x9f   : > { %1412 = vmatmul.mubr.bf16.vlgmr.msra.gmra.mxu0 %v1357_v49  ;;  %1420 = vmatmul.mubr.bf16.vlgmr.msra.gmra.mxu1 %v1361_v50 }
  0xa0   : > { %1415 = vmatprep.mubr.bf16.mxu0 %v1358_v54  ;;  %1423 = vmatprep.mubr.bf16.mxu1 %v1362_v55 }
  0xa7   : > { %1416 = vmatmul.mubr.bf16.gmra.mxu0 %v1359_v63  ;;  %1424 = vmatmul.mubr.bf16.gmra.mxu1 %v1363_v0 }
 0x15f   : > { %v1413_v3 = vpop.f32.mrf.mxu0  ;;  %v1421_v4 = vpop.f32.mrf.mxu1 }
 0x160   : > { %v715_v7 = vadd.f32 %v1413_v3, %v490_v1  ;;  %v723_v8 = vadd.f32 %v1421_v4, %v498_v2 }
 0x161   : > { %v650_v9 = vpop.f32.mrf.mxu0  ;;  %v682_v10 = vpop.f32.mrf.mxu1 }
 0x162   : > { %731 = vst [vmem:[#allocation2 + $0x58] sm:$0xff] %v715_v7  ;;  %739 = vst [vmem:[#allocation2 + $0x10] sm:$0xff] %v723_v8  ;;  %v713_v13 = vadd.f32 %v650_v9, %v488_v5  ;;  %v721_v14 = vadd.f32 %v682_v10, %v496_v6 }
 0x163   : > { %v1414_v15 = vpop.f32.mrf.mxu0  ;;  %v1422_v16 = vpop.f32.mrf.mxu1 }
 0x164   : > { %729 = vst [vmem:[#allocation2 + $0x30] sm:$0xff] %v713_v13  ;;  %737 = vst [vmem:[#allocation2 + $0x40] sm:$0xff] %v721_v14  ;;  %v716_v19 = vadd.f32 %v1414_v15, %v491_v11  ;;  %v724_v20 = vadd.f32 %v1422_v16, %v499_v12 }
 0x165   : > { %v653_v21 = vpop.f32.mrf.mxu0  ;;  %v685_v22 = vpop.f32.mrf.mxu1 }
 0x166   : > { %732 = vst [vmem:[#allocation2 + $0x18] sm:$0xff] %v716_v19  ;;  %740 = vst [vmem:[#allocation2 + $0x38] sm:$0xff] %v724_v20  ;;  %v714_v25 = vadd.f32 %v653_v21, %v489_v17  ;;  %v722_v26 = vadd.f32 %v685_v22, %v497_v18 }
 0x167   : > { %v1417_v27 = vpop.f32.mrf.mxu0  ;;  %v1425_v28 = vpop.f32.mrf.mxu1 }
 0x168   : > { %730 = vst [vmem:[#allocation2] sm:$0xff] %v714_v25  ;;  %738 = vst [vmem:[#allocation2 + $0x20] sm:$0xff] %v722_v26  ;;  %v719_v31 = vadd.f32 %v1417_v27, %v494_v23  ;;  %v727_v32 = vadd.f32 %v1425_v28, %v502_v24 }
 0x169   : > { %v666_v33 = vpop.f32.mrf.mxu0  ;;  %v698_v34 = vpop.f32.mrf.mxu1 }
 0x16a   : > { %735 = vst [vmem:[#allocation2 + $0x8] sm:$0xff] %v719_v31  ;;  %743 = vst [vmem:[#allocation2 + $0x78] sm:$0xff] %v727_v32  ;;  %v717_v37 = vadd.f32 %v666_v33, %v492_v29  ;;  %v725_v38 = vadd.f32 %v698_v34, %v500_v30 }
 0x16b   : > { %v1418_v39 = vpop.f32.mrf.mxu0  ;;  %v1426_v40 = vpop.f32.mrf.mxu1 }
 0x16c   : > { %733 = vst [vmem:[#allocation2 + $0x50] sm:$0xff] %v717_v37  ;;  %741 = vst [vmem:[#allocation2 + $0x60] sm:$0xff] %v725_v38  ;;  %v720_v43 = vadd.f32 %v1418_v39, %v495_v35  ;;  %v728_v44 = vadd.f32 %v1426_v40, %v503_v36  ;;  %748 = sbr.rel (%p1372_p6) target bundleno = 830 (0x33e), region = 72 }
 0x16d   : > { %v669_v45 = vpop.f32.mrf.mxu0  ;;  %v701_v46 = vpop.f32.mrf.mxu1 }
 0x16e   : > { %736 = vst [vmem:[#allocation2 + $0x48] sm:$0xff] %v720_v43  ;;  %744 = vst [vmem:[#allocation2 + $0x28] sm:$0xff] %v728_v44  ;;  %v718_v47 = vadd.f32 %v669_v45, %v493_v41  ;;  %v726_v48 = vadd.f32 %v701_v46, %v501_v42 }
 0x170   : > { %734 = vst [vmem:[#allocation2 + $0x68] sm:$0xff] %v718_v47  ;;  %742 = vst [vmem:[#allocation2 + $0x70] sm:$0xff] %v726_v48 }
 0x171   : > { %v751_v49 = vld [vmem:[#allocation3 + $0x10] sm:$0xff]  ;;  %v749_v51 = vld [vmem:[#allocation3] sm:$0xff]  ;;  %v752_v54 = vld [vmem:[#allocation3 + $0x18] sm:$0xff]  ;;  %vm1085_vm0 = vcmask 130112   ;;  %vm1092_vm1 = vcmask 195712   ;;  %vm1099_vm2 = vcmask 261312  }
 0x172   : > { %v767_v50 = vld [vmem:[#allocation6 + $0x10] sm:$0xff]  ;;  %v765_v53 = vld [vmem:[#allocation6] sm:$0xff]  ;;  %v768_v55 = vld [vmem:[#allocation6 + $0x18] sm:$0xff]  ;;  %vm1106_vm3 = vcmask 326912   ;;  %vm1113_vm4 = vcmask 392512   ;;  %vm1120_vm5 = vcmask 458112  }
 0x173   : > { %v783_v52 = vmul.f32 %v767_v50, %v751_v49  ;;  %v781_v56 = vmul.f32 %v765_v53, %v749_v51  ;;  %v750_v57 = vld [vmem:[#allocation3 + $0x8] sm:$0xff]  ;;  %v784_v59 = vmul.f32 %v768_v55, %v752_v54  ;;  %v753_v63 = vld [vmem:[#allocation3 + $0x20] sm:$0xff]  ;;  %v756_v3 = vld [vmem:[#allocation3 + $0x38] sm:$0xff]  ;;  %vm1127_vm6 = vcmask 523712  }
 0x174   : > { %v766_v58 = vld [vmem:[#allocation6 + $0x8] sm:$0xff]  ;;  %v769_v0 = vld [vmem:[#allocation6 + $0x20] sm:$0xff]  ;;  %v772_v4 = vld [vmem:[#allocation6 + $0x38] sm:$0xff]  ;;  %vm1134_vm7 = vcmask 589312   ;;  %vm1141_vm8 = vcmask 654912   ;;  %vm1148_vm9 = vcmask 720512  }
 0x175   : > { %801 = vadd.xlane.f32.xlu1 %v783_v52  ;;  %797 = vadd.xlane.f32.xlu0 %v781_v56  ;;  %v782_v60 = vmul.f32 %v766_v58, %v750_v57  ;;  %v754_v61 = vld [vmem:[#allocation3 + $0x28] sm:$0xff]  ;;  %v785_v2 = vmul.f32 %v769_v0, %v753_v63  ;;  %v755_v5 = vld [vmem:[#allocation3 + $0x30] sm:$0xff]  ;;  %v788_v7 = vmul.f32 %v772_v4, %v756_v3  ;;  %v831_v9 = vld [vmem:[#allocation2] sm:$0xff]  ;;  %v1786_v52 = vmov 0  }
 0x176   : > { %v770_v62 = vld [vmem:[#allocation6 + $0x28] sm:$0xff]  ;;  %v771_v6 = vld [vmem:[#allocation6 + $0x30] sm:$0xff]  ;;  %v847_v11 = vmul.f32 %v831_v9, %v766_v58  ;;  %v833_v13 = vld [vmem:[#allocation2 + $0x18] sm:$0xff]  ;;  %1550 = vset.pattern.permute.xlu0 %v1786_v52  ;;  %1551 = vset.pattern.permute.xlu1 %v1786_v52  ;;  %vm1155_vm10 = vcmask 786112   ;;  %vm1162_vm11 = vcmask 851712   ;;  %vm1169_vm12 = vcmask 917312  }
 0x177   : > { %v786_v1 = vmul.f32 %v770_v62, %v754_v61  ;;  %v787_v8 = vmul.f32 %v771_v6, %v755_v5  ;;  %v830_v10 = vld [vmem:[#allocation2 + $0x30] sm:$0xff]  ;;  %v832_v14 = vld [vmem:[#allocation2 + $0x58] sm:$0xff]  ;;  %v849_v15 = vmul.f32 %v833_v13, %v768_v55  ;;  %v835_v17 = vld [vmem:[#allocation2 + $0x68] sm:$0xff]  ;;  %vm1176_vm13 = vcmask 982912  }
 0x178   : > { %v846_v12 = vmul.f32 %v830_v10, %v765_v53  ;;  %v848_v16 = vmul.f32 %v832_v14, %v767_v50  ;;  %v834_v18 = vld [vmem:[#allocation2 + $0x50] sm:$0xff]  ;;  %v851_v19 = vmul.f32 %v835_v17, %v770_v62  ;;  %v837_v21 = vld [vmem:[#allocation2 + $0x48] sm:$0xff]  ;;  %v839_v26 = vld [vmem:[#allocation2 + $0x20] sm:$0xff]  ;;  %vm1183_vm14 = vcmask 1048512  }
 0x179   : > { %803 = vadd.xlane.f32.xlu1 %v784_v59  ;;  %799 = vadd.xlane.f32.xlu0 %v782_v60  ;;  %v850_v20 = vmul.f32 %v834_v18, %v769_v0  ;;  %v836_v22 = vld [vmem:[#allocation2 + $0x8] sm:$0xff]  ;;  %v853_v23 = vmul.f32 %v837_v21, %v772_v4  ;;  %v773_v27 = vld [vmem:[#allocation6 + $0x40] sm:$0xff]  ;;  %v775_v31 = vld [vmem:[#allocation6 + $0x50] sm:$0xff] }
 0x17a   : > { %v852_v24 = vmul.f32 %v836_v22, %v771_v6  ;;  %v774_v25 = vld [vmem:[#allocation6 + $0x48] sm:$0xff]  ;;  %v838_v28 = vld [vmem:[#allocation2 + $0x40] sm:$0xff]  ;;  %v840_v32 = vld [vmem:[#allocation2 + $0x10] sm:$0xff] }
 0x17b   : > { %v855_v29 = vmul.f32 %v839_v26, %v774_v25  ;;  %v854_v30 = vmul.f32 %v838_v28, %v773_v27  ;;  %v757_v33 = vld [vmem:[#allocation3 + $0x40] sm:$0xff]  ;;  %v856_v34 = vmul.f32 %v840_v32, %v775_v31  ;;  %v776_v36 = vld [vmem:[#allocation6 + $0x58] sm:$0xff]  ;;  %v758_v38 = vld [vmem:[#allocation3 + $0x48] sm:$0xff] }
 0x17c   : > { %v789_v35 = vmul.f32 %v773_v27, %v757_v33  ;;  %v841_v37 = vld [vmem:[#allocation2 + $0x38] sm:$0xff]  ;;  %v790_v40 = vmul.f32 %v774_v25, %v758_v38  ;;  %v777_v41 = vld [vmem:[#allocation6 + $0x60] sm:$0xff]  ;;  %v759_v43 = vld [vmem:[#allocation3 + $0x50] sm:$0xff] }
 0x17d   : > { %807 = vadd.xlane.f32.xlu1 %v786_v1  ;;  %805 = vadd.xlane.f32.xlu0 %v785_v2  ;;  %v857_v39 = vmul.f32 %v841_v37, %v776_v36  ;;  %v842_v42 = vld [vmem:[#allocation2 + $0x60] sm:$0xff]  ;;  %v791_v45 = vmul.f32 %v775_v31, %v759_v43  ;;  %v778_v46 = vld [vmem:[#allocation6 + $0x68] sm:$0xff]  ;;  %v843_v47 = vld [vmem:[#allocation2 + $0x70] sm:$0xff] }
 0x17e   : > { %v858_v44 = vmul.f32 %v842_v42, %v777_v41  ;;  %v760_v48 = vld [vmem:[#allocation3 + $0x58] sm:$0xff]  ;;  %v859_v49 = vmul.f32 %v843_v47, %v778_v46  ;;  %v2035_v51 = vld [vmem:[%s2148_s5] ss:$0 sm:$0xff]  ;;  %v779_v54 = vld [vmem:[#allocation6 + $0x70] sm:$0xff] }
 0x17f   : > { %v792_v50 = vmul.f32 %v776_v36, %v760_v48  ;;  %v761_v53 = vld [vmem:[#allocation3 + $0x60] sm:$0xff]  ;;  %v844_v55 = vld [vmem:[#allocation2 + $0x78] sm:$0xff]  ;;  %v762_v58 = vld [vmem:[#allocation3 + $0x68] sm:$0xff] }
 0x180   : > { %v793_v56 = vmul.f32 %v777_v41, %v761_v53  ;;  %v860_v57 = vmul.f32 %v844_v55, %v779_v54  ;;  %v794_v59 = vmul.f32 %v778_v46, %v762_v58  ;;  %v780_v60 = vld [vmem:[#allocation6 + $0x78] sm:$0xff]  ;;  %v845_v61 = vld [vmem:[#allocation2 + $0x28] sm:$0xff]  ;;  %v763_v5 = vld [vmem:[#allocation3 + $0x70] sm:$0xff] }
 0x181   : > { %811 = vadd.xlane.f32.xlu1 %v788_v7  ;;  %809 = vadd.xlane.f32.xlu0 %v787_v8  ;;  %v861_v62 = vmul.f32 %v845_v61, %v780_v60  ;;  %v795_v8 = vmul.f32 %v779_v54, %v763_v5  ;;  %v764_v13 = vld [vmem:[#allocation3 + $0x78] sm:$0xff] }
 0x185   : > { %864 = vadd.xlane.f32.xlu1 %v847_v11  ;;  %862 = vadd.xlane.f32.xlu0 %v846_v12 }
 0x189   : > { %868 = vadd.xlane.f32.xlu1 %v849_v15  ;;  %866 = vadd.xlane.f32.xlu0 %v848_v16  ;;  %v796_v16 = vmul.f32 %v780_v60, %v764_v13 }
 0x18d   : > { %872 = vadd.xlane.f32.xlu1 %v851_v19  ;;  %870 = vadd.xlane.f32.xlu0 %v850_v20 }
 0x191   : > { %876 = vadd.xlane.f32.xlu1 %v853_v23  ;;  %874 = vadd.xlane.f32.xlu0 %v852_v24 }
 0x195   : > { %880 = vadd.xlane.f32.xlu1 %v855_v29  ;;  %878 = vadd.xlane.f32.xlu0 %v854_v30 }
 0x199   : > { %882 = vadd.xlane.f32.xlu1 %v856_v34  ;;  %813 = vadd.xlane.f32.xlu0 %v789_v35 }
 0x19d   : > { %884 = vadd.xlane.f32.xlu1 %v857_v39  ;;  %815 = vadd.xlane.f32.xlu0 %v790_v40 }
 0x1a1   : > { %886 = vadd.xlane.f32.xlu1 %v858_v44  ;;  %817 = vadd.xlane.f32.xlu0 %v791_v45 }
 0x1a5   : > { %888 = vadd.xlane.f32.xlu1 %v859_v49  ;;  %819 = vadd.xlane.f32.xlu0 %v792_v50 }
 0x1b6   : > { %904 = vbcast.lane.b32.xlu1 %v2035_v51, 264 }
 0x1bb   : > { %900 = vbcast.lane.b32.xlu0 %v2035_v51, 256 }
 0x1da   : > { %821 = vadd.xlane.f32.xlu1 %v793_v56  ;;  %890 = vadd.xlane.f32.xlu0 %v860_v57 }
 0x1de   : > { %823 = vadd.xlane.f32.xlu1 %v794_v59 }
 0x1e2   : > { %892 = vadd.xlane.f32.xlu1 %v861_v62 }
 0x1f0   : > { %908 = vbcast.lane.b32.xlu0 %v2035_v51, 272 }
 0x1f3   : > { %912 = vbcast.lane.b32.xlu1 %v2035_v51, 280 }
 0x1f7   : > { %916 = vbcast.lane.b32.xlu1 %v2035_v51, 288 }
 0x1fe   : > { %v802_v63 = vpop.xlane.xlu1 %801  ;;  %v798_v0 = vpop.xlane.xlu0 %797 }
 0x202   : > { %v804_v1 = vpop.xlane.xlu1 %803  ;;  %v800_v2 = vpop.xlane.xlu0 %799 }
 0x206   : > { %v2042_v3 = vpop.xlane.xlu1 %807  ;;  %v806_v4 = vpop.xlane.xlu0 %805 }
 0x20a   : > { %v2044_v6 = vpop.xlane.xlu1 %811  ;;  %v2046_v7 = vpop.xlane.xlu0 %809 }
 0x20e   : > { %v865_v9 = vpop.xlane.xlu1 %864  ;;  %v863_v10 = vpop.xlane.xlu0 %862 }
 0x20f   : > { %825 = vadd.xlane.f32.xlu0 %v795_v8 }
 0x212   : > { %v869_v11 = vpop.xlane.xlu1 %868  ;;  %v867_v12 = vpop.xlane.xlu0 %866 }
 0x216   : > { %v873_v14 = vpop.xlane.xlu1 %872  ;;  %v871_v15 = vpop.xlane.xlu0 %870 }
 0x21a   : > { %v877_v17 = vpop.xlane.xlu1 %876  ;;  %v875_v18 = vpop.xlane.xlu0 %874 }
 0x21b   : > { %827 = vadd.xlane.f32.xlu1 %v796_v16 }
 0x21e   : > { %v881_v19 = vpop.xlane.xlu1 %880  ;;  %v879_v20 = vpop.xlane.xlu0 %878 }
 0x222   : > { %v2048_v21 = vpop.xlane.xlu1 %882  ;;  %v814_v22 = vpop.xlane.xlu0 %813 }
 0x225   : > { %920 = vbcast.lane.b32.xlu0 %v2035_v51, 296 }
 0x226   : > { %v2051_v23 = vpop.xlane.xlu1 %884  ;;  %v816_v24 = vpop.xlane.xlu0 %815 }
 0x229   : > { %928 = vbcast.lane.b32.xlu0 %v2035_v51, 312 }
 0x22a   : > { %v2054_v25 = vpop.xlane.xlu1 %886  ;;  %v2056_v26 = vpop.xlane.xlu0 %817 }
 0x22c   : > { %924 = vbcast.lane.b32.xlu1 %v2035_v51, 304 }
 0x22d   : > { %932 = vbcast.lane.b32.xlu0 %v2035_v51, 320 }
 0x22e   : > { %v820_v27 = vpop.xlane.xlu0 %819  ;;  %v2061_v28 = vpop.xlane.xlu1 %888 }
 0x230   : > { %936 = vbcast.lane.b32.xlu1 %v2035_v51, 328 }
 0x231   : > { %940 = vbcast.lane.b32.xlu0 %v2035_v51, 336 }
 0x232   : > { %v901_v29 = vpop.permute.xlu0 %900  ;;  %v905_v30 = vpop.permute.xlu1 %904 }
 0x233   : > { %v978_v31 = vmul.f32 %v901_v29, %v863_v10  ;;  %v979_v32 = vmul.f32 %v905_v30, %v865_v9 }
 0x234   : > { %944 = vbcast.lane.b32.xlu1 %v2035_v51, 344 }
 0x235   : > { %948 = vbcast.lane.b32.xlu0 %v2035_v51, 352  ;;  %v994_v33 = vadd.f32 %v978_v31, %v798_v0  ;;  %v995_v34 = vadd.f32 %v979_v32, %v800_v2 }
 0x238   : > { %952 = vbcast.lane.b32.xlu1 %v2035_v51, 360 }
 0x239   : > { %956 = vbcast.lane.b32.xlu0 %v2035_v51, 368 }
 0x23c   : > { %960 = vbcast.lane.b32.xlu1 %v2035_v51, 376 }
 0x23d   : > { %1027 = vperm.xlu0 %1550, %v994_v33  }
 0x240   : > { %1030 = vperm.xlu1 %1551, %v995_v34  }
 0x263   : > { %v822_v35 = vpop.xlane.xlu1 %821  ;;  %v891_v36 = vpop.xlane.xlu0 %890 }
 0x267   : > { %v824_v37 = vpop.xlane.xlu1 %823  ;;  %v909_v38 = vpop.permute.xlu0 %908 }
 0x268   : > { %v980_v39 = vmul.f32 %v909_v38, %v867_v12 }
 0x26a   : > { %v996_v40 = vadd.f32 %v980_v39, %v802_v63 }
 0x26b   : > { %v893_v41 = vpop.xlane.xlu1 %892 }
 0x26c   : > { %1033 = vperm.xlu1 %1551, %v996_v40  }
 0x26f   : > { %v913_v42 = vpop.permute.xlu1 %912 }
 0x270   : > { %v981_v43 = vmul.f32 %v913_v42, %v869_v11 }
 0x272   : > { %v997_v44 = vadd.f32 %v981_v43, %v804_v1 }
 0x273   : > { %v917_v45 = vpop.permute.xlu1 %916 }
 0x274   : > { %v982_v46 = vmul.f32 %v917_v45, %v871_v15  ;;  %1036 = vperm.xlu0 %1550, %v997_v44  }
 0x276   : > { %v998_v47 = vadd.f32 %v982_v46, %v806_v4 }
 0x278   : > { %1039 = vperm.xlu1 %1551, %v998_v47  }
 0x298   : > { %v826_v48 = vpop.xlane.xlu0 %825 }
 0x29c   : > { %v921_v49 = vpop.permute.xlu0 %920 }
 0x29d   : > { %v983_v50 = vmul.f32 %v921_v49, %v873_v14 }
 0x29f   : > { %v999_v51 = vadd.f32 %v983_v50, %v2042_v3 }
 0x2a0   : > { %v929_v52 = vpop.permute.xlu0 %928 }
 0x2a1   : > { %v985_v53 = vmul.f32 %v929_v52, %v877_v17  ;;  %1042 = vperm.xlu0 %1550, %v999_v51  }
 0x2a3   : > { %v1001_v54 = vadd.f32 %v985_v53, %v2044_v6 }
 0x2a4   : > { %v828_v55 = vpop.xlane.xlu1 %827  ;;  %v933_v56 = vpop.permute.xlu0 %932 }
 0x2a5   : > { %1048 = vperm.xlu0 %1550, %v1001_v54   ;;  %v986_v60 = vmul.f32 %v933_v56, %v879_v20 }
 0x2a7   : > { %v1002_v1 = vadd.f32 %v986_v60, %v814_v22 }
 0x2a8   : > { %v925_v57 = vpop.permute.xlu1 %924  ;;  %v941_v59 = vpop.permute.xlu0 %940 }
 0x2a9   : > { %v984_v58 = vmul.f32 %v925_v57, %v875_v18  ;;  %v988_v2 = vmul.f32 %v941_v59, %v2048_v21 }
 0x2ab   : > { %v1000_v61 = vadd.f32 %v984_v58, %v2046_v7  ;;  %v1004_v6 = vadd.f32 %v988_v2, %v2056_v26 }
 0x2ac   : > { %v937_v62 = vpop.permute.xlu1 %936  ;;  %v949_v0 = vpop.permute.xlu0 %948 }
 0x2ad   : > { %v987_v63 = vmul.f32 %v937_v62, %v881_v19  ;;  %1045 = vperm.xlu1 %1551, %v1000_v61   ;;  %v990_v8 = vmul.f32 %v949_v0, %v2054_v25  ;;  %v1074_v19 = vlaneseq }
 0x2af   : > { %v1003_v3 = vadd.f32 %v987_v63, %v816_v24  ;;  %v1006_v12 = vadd.f32 %v990_v8, %v822_v35  ;;  %v2077_v20 = vand.u32 127, %v1074_v19  ;;  %v2081_v25 = vshrl.u32 %v1074_v19, 7 }
 0x2b0   : > { %v945_v4 = vpop.permute.xlu1 %944  ;;  %v957_v10 = vpop.permute.xlu0 %956 }
 0x2b1   : > { %v989_v5 = vmul.f32 %v945_v4, %v2051_v23  ;;  %1054 = vperm.xlu0 %1550, %v1003_v3   ;;  %1051 = vperm.xlu1 %1551, %v1002_v1   ;;  %v992_v13 = vmul.f32 %v957_v10, %v891_v36  ;;  %v1080_v22 = vadd.s32 4294967288, %v2077_v20  ;;  %v1087_v24 = vadd.s32 4294967280, %v2077_v20 }
 0x2b2   : > { %v1094_v26 = vadd.s32 4294967272, %v2077_v20  ;;  %v1108_v31 = vadd.s32 4294967256, %v2077_v20  ;;  %v1078_v33 = vsub.s32 %v2077_v20, %v2081_v25  ;;  %v1115_v36 = vadd.s32 4294967248, %v2077_v20 }
 0x2b3   : > { %v1005_v9 = vadd.f32 %v989_v5, %v820_v27  ;;  %v1008_v17 = vadd.f32 %v992_v13, %v826_v48  ;;  %v1101_v27 = vadd.s32 4294967264, %v2077_v20  ;;  %v1090_v32 = vsub.s32 %v1087_v24, %v2081_v25 }
 0x2b4   : > { %v953_v7 = vpop.permute.xlu1 %952  ;;  %v1097_v34 = vsub.s32 %v1094_v26, %v2081_v25  ;;  %v1111_v39 = vsub.s32 %v1108_v31, %v2081_v25  ;;  %v1122_v44 = vadd.s32 4294967240, %v2077_v20  ;;  %v1118_v46 = vsub.s32 %v1115_v36, %v2081_v25 }
 0x2b5   : > { %v991_v11 = vmul.f32 %v953_v7, %v2061_v28  ;;  %1060 = vperm.xlu0 %1550, %v1005_v9   ;;  %1057 = vperm.xlu1 %1551, %v1004_v6   ;;  %v1083_v28 = vsub.s32 %v1080_v22, %v2081_v25  ;;  %v1104_v35 = vsub.s32 %v1101_v27, %v2081_v25  ;;  %v1129_v47 = vadd.s32 4294967232, %v2077_v20 }
 0x2b6   : > { %v1136_v50 = vadd.s32 4294967224, %v2077_v20  ;;  %v1125_v53 = vsub.s32 %v1122_v44, %v2081_v25  ;;  %v1143_v59 = vadd.s32 4294967216, %v2077_v20  ;;  %v1150_v62 = vadd.s32 4294967208, %v2077_v20 }
 0x2b7   : > { %v1007_v14 = vadd.f32 %v991_v11, %v824_v37  ;;  %v1132_v58 = vsub.s32 %v1129_v47, %v2081_v25  ;;  %v1157_v5 = vadd.s32 4294967200, %v2077_v20  ;;  %v1164_v10 = vadd.s32 4294967192, %v2077_v20 }
 0x2b8   : > { %v961_v15 = vpop.permute.xlu1 %960  ;;  %v1028_v21 = vpop.permute.xlu0 %1027  ;;  %v1139_v61 = vsub.s32 %v1136_v50, %v2081_v25  ;;  %v1146_v4 = vsub.s32 %v1143_v59, %v2081_v25  ;;  %v1153_v9 = vsub.s32 %v1150_v62, %v2081_v25 }
 0x2b9   : > { %v993_v16 = vmul.f32 %v961_v15, %v893_v41  ;;  %1066 = vperm.xlu0 %1550, %v1007_v14   ;;  %1063 = vperm.xlu1 %1551, %v1006_v12   ;;  %v1079_v42 = vrot.slane %v1028_v21, %v1078_v33  ;;  %v1160_v14 = vsub.s32 %v1157_v5, %v2081_v25  ;;  %v1171_v15 = vadd.s32 4294967184, %v2077_v20 }
 0x2ba   : > { %v1167_v19 = vsub.s32 %v1164_v10, %v2081_v25 }
 0x2bb   : > { %v1009_v18 = vadd.f32 %v993_v16, %v828_v55  ;;  %v1178_v16 = vadd.s32 4294967176, %v2077_v20  ;;  %v1174_v26 = vsub.s32 %v1171_v15, %v2081_v25 }
 0x2bc   : > { %v1031_v23 = vpop.permute.xlu1 %1030 }
 0x2bd   : > { %1072 = vperm.xlu0 %1550, %v1009_v18   ;;  %1069 = vperm.xlu1 %1551, %v1008_v17   ;;  %v1084_v37 = vrot.slane %v1031_v23, %v1083_v28  ;;  %v1181_v27 = vsub.s32 %v1178_v16, %v2081_v25 }
 0x2bf   : > { %v1086_v48 = vsel %vm1085_vm0, %v1084_v37, %v1079_v42 }
 0x2e7   : > { %v1034_v29 = vpop.permute.xlu1 %1033 }
 0x2e8   : > { %v1091_v41 = vrot.slane %v1034_v29, %v1090_v32 }
 0x2ea   : > { %v1093_v51 = vsel %vm1092_vm1, %v1091_v41, %v1086_v48 }
 0x2ef   : > { %v1037_v30 = vpop.permute.xlu0 %1036 }
 0x2f0   : > { %v1098_v43 = vrot.slane %v1037_v30, %v1097_v34 }
 0x2f2   : > { %v1100_v52 = vsel %vm1099_vm2, %v1098_v43, %v1093_v51 }
 0x2f3   : > { %v1040_v38 = vpop.permute.xlu1 %1039 }
 0x2f4   : > { %v1105_v45 = vrot.slane %v1040_v38, %v1104_v35 }
 0x2f6   : > { %v1107_v56 = vsel %vm1106_vm3, %v1105_v45, %v1100_v52 }
 0x31c   : > { %v1043_v40 = vpop.permute.xlu0 %1042 }
 0x31d   : > { %v1112_v49 = vrot.slane %v1043_v40, %v1111_v39 }
 0x31f   : > { %v1114_v60 = vsel %vm1113_vm4, %v1112_v49, %v1107_v56 }
 0x320   : > { %v1049_v54 = vpop.permute.xlu0 %1048 }
 0x321   : > { %v1126_v0 = vrot.slane %v1049_v54, %v1125_v53 }
 0x328   : > { %v1046_v55 = vpop.permute.xlu1 %1045 }
 0x329   : > { %v1119_v57 = vrot.slane %v1046_v55, %v1118_v46 }
 0x32b   : > { %v1121_v63 = vsel %vm1120_vm5, %v1119_v57, %v1114_v60 }
 0x32c   : > { %v1052_v1 = vpop.permute.xlu1 %1051  ;;  %v1055_v2 = vpop.permute.xlu0 %1054  ;;  %v1128_v6 = vsel %vm1127_vm6, %v1126_v0, %v1121_v63 }
 0x32d   : > { %v1133_v3 = vrot.slane %v1052_v1, %v1132_v58  ;;  %v1140_v8 = vrot.slane %v1055_v2, %v1139_v61 }
 0x32f   : > { %v1135_v7 = vsel %vm1134_vm7, %v1133_v3, %v1128_v6 }
 0x330   : > { %v1058_v11 = vpop.permute.xlu1 %1057  ;;  %v1061_v12 = vpop.permute.xlu0 %1060  ;;  %v1142_v17 = vsel %vm1141_vm8, %v1140_v8, %v1135_v7 }
 0x331   : > { %v1147_v13 = vrot.slane %v1058_v11, %v1146_v4  ;;  %v1154_v18 = vrot.slane %v1061_v12, %v1153_v9 }
 0x333   : > { %v1149_v21 = vsel %vm1148_vm9, %v1147_v13, %v1142_v17 }
 0x334   : > { %v1064_v22 = vpop.permute.xlu1 %1063  ;;  %v1067_v23 = vpop.permute.xlu0 %1066  ;;  %v1156_v28 = vsel %vm1155_vm10, %v1154_v18, %v1149_v21 }
 0x335   : > { %v1161_v24 = vrot.slane %v1064_v22, %v1160_v14  ;;  %v1168_v29 = vrot.slane %v1067_v23, %v1167_v19 }
 0x337   : > { %v1163_v30 = vsel %vm1162_vm11, %v1161_v24, %v1156_v28 }
 0x338   : > { %v1070_v20 = vpop.permute.xlu1 %1069  ;;  %v1073_v31 = vpop.permute.xlu0 %1072  ;;  %v1170_v34 = vsel %vm1169_vm12, %v1168_v29, %v1163_v30 }
 0x339   : > { %v1175_v32 = vrot.slane %v1070_v20, %v1174_v26  ;;  %v1182_v33 = vrot.slane %v1073_v31, %v1181_v27 }
 0x33b   : > { %v1177_v35 = vsel %vm1176_vm13, %v1175_v32, %v1170_v34 }
 0x33c   : > { %v1184_v36 = vsel %vm1183_vm14, %v1182_v33, %v1177_v35 }
 0x33d   : > { %1186 = vst [vmem:[#allocation11] sm:$0x1] %v1184_v36 }
 0x33e PF: > { %p1483_p12 = scmp.eq.s32.totalorder %s1852_s27, 1  ;;  %s1787_s21 = smov [#allocation11]  }
 0x33f   : > { %s1196_s11 = sshll.u32 %s1787_s21, 4  ;;  %s1197_s11 = int_to_ptr.vmem [resolvable:$true] %s1196_s11 }
 0x340   : > { %s1688_s23 = scalar_lea.vmem %s1197_s11, 16  ;;  %s1694_s14 = scalar_lea.vmem %s1197_s11, 32 }
 0x341   : > { %p1689_p13 = scmp.ne.s32.totalorder %s1197_s11, %s1688_s23  ;;  %p1695_p3 = scmp.lt.s32.totalorder %s1197_s11, %s1197_s11 }
 0x342   : > { %p1696_p0 = scmp.lt.s32.totalorder %s1694_s14, %s1688_s23 }
 0x343   : > { %p1690_p9 = pnand %p1689_p13, %p1483_p12 }
 0x344   : > { %p1697_p11 = por %p1696_p0, %p1695_p3 }
 0x345   : > { %p1691_p4 = pneg %p1690_p9 }
 0x347   : > { %p1698_p1 = pnand %p1697_p11, %p1691_p4 }
 0x349   : > { %1701 = shalt.err (!%p1698_p1)
}
 0x34a   : > { %1458 = dma.vmem_to_hbm [thread:$0]  (%p1483_p12), %s1197_s11, 16, %s2149_s6, [#allocation5]  }
 0x34b   : > { %1749 = dma.done.wait (%p1483_p12), [#allocation5], 16  }
 0x34c   : > { %1751 = vsyncadd (%p1483_p12), [#allocation5], 4294967280 }
 0x34d PF: > { %s19_s26 = sadd.s32 1, %s1774_s26   ;;  %s2174_s0 = sld [smem:[#allocation16_spill]] }
 0x34e   : > { %p16_p10 = scmp.ge.s32.totalorder %s19_s26, 4   ;;  %s2175_s23 = sld [smem:[#allocation18_spill]] }
 0x34f   : > { %s2176_s18 = sld [smem:[#allocation17_spill]]  ;;  %s2177_s21 = smov %s1758_s22 }
 0x350   : > { %s2179_s24 = smov %s1770_s25 }
 0x351   :  { %18 = sbr.rel (!%p16_p10) target bundleno = 8 (0x8), region = 124 }
 0x353   : > { %s2178_s22 = smov %s2174_s0 }
 0x355   : > { %s2180_s25 = smov %s2176_s18 }
 0x356   :  { %1209 = vsyncpa [#allocation4], 1 }
 0x357   :  { %1211 = vsyncpa [#allocation4 + $0x1], 1 }
 0x358   :  { %1212 = vsyncpa [#allocation7], 1 }
 0x359   :  { %1213 = vsyncpa [#allocation5], 1 }
 0x35a   :  { %1215 = vsyncpa [#allocation5 + $0x1], 1 }

</bundles_post_ra>
